<compile_context>
chip_gen: v7x
topology: tpu7x:2x2x1
jax: 0.10.0
libtpu: 0.0.40
codegen_flags: <defaults>
</compile_context>

<pallas_src>
import functools

import jax
import jax.numpy as jnp
from jax.experimental import pallas as pl
from jax.experimental.pallas import tpu as pltpu


def _ceil_to(x, m):
    return ((x + m - 1) // m) * m


def _decoder_kernel(x_ref, w_ref, b_ref, o_ref, acc_ref, *, inv_hw):
    # x_ref  : (n_tile, c_tile, HW)  input dtype, spatial on lanes (native NCHW layout)
    # w_ref  : (c_tile, OUTp)        weight.T channel-slice, OUT padded to 128
    # b_ref  : (1, OUTp)             bias, zero padded
    # o_ref  : (n_tile, OUTp)        written on the last channel step
    # acc_ref: (n_tile, OUTp) f32    matmul accumulator, resident across channel steps
    j = pl.program_id(1)

    @pl.when(j == 0)
    def _():
        acc_ref[...] = jnp.zeros_like(acc_ref)

    # Spatial (lane-axis) reduction in f32, then a partial matmul over this channel
    # slice, accumulated in f32.
    pooled = jnp.sum(x_ref[...], axis=2, dtype=jnp.float32)            # (n_tile, c_tile)
    acc_ref[...] += jnp.dot(pooled.astype(w_ref.dtype), w_ref[...],
                            preferred_element_type=jnp.float32)        # (n_tile, OUTp)

    @pl.when(j == pl.num_programs(1) - 1)
    def _():
        # Scale the f32 accumulator by 1/(H*W) here instead of pre-scaling the weight
        # (avoids re-rounding the weights in their storage dtype).
        out = acc_ref[...] * inv_hw + b_ref[...].astype(jnp.float32)
        o_ref[...] = out.astype(o_ref.dtype)


def _vmem_cap_bytes():
    # Leave ~25% headroom for Mosaic internal scratch / semaphores:
    # v5e/v6e (128 MiB) -> ~96 MiB, v7x (64 MiB) -> ~48 MiB.
    try:
        cap = pltpu.get_tpu_info().vmem_capacity_bytes
    except Exception:
        cap = 64 << 20  # conservative fallback (v7x physical size)
    return int(cap * 3 // 4)


def resnet_decoder(x_nchw, weight, bias, *, n_tile=None, c_tile=None):
    """Global average pool + flatten + Linear.

    x_nchw: (N, C, H, W); weight: (out_ch, in_ch) [PyTorch layout]; bias: (out_ch,).
    """
    n, c, h, w = x_nchw.shape
    out_ch = weight.shape[0]
    hw = h * w
    dtype = x_nchw.dtype
    isz = jnp.dtype(dtype).itemsize

    # ---- free layout plumbing: (N, C, H, W) -> (N, C, H*W), no transpose/pad of x ---
    x_r = x_nchw.reshape(n, c, hw)

    # ---- lane-dense output width -----------------------------------------------------
    outp = _ceil_to(out_ch, 128)

    # ---- batch tile: divides N (no x padding) whenever possible ----------------------
    n_cap = 64 if isz <= 2 else 32
    np_ = n
    if n_tile is None:
        if n <= n_cap:
            n_tile = n                                           # full-dim block
        else:
            n_tile = next((t for t in range(n_cap, 7, -8) if n % t == 0), None)
            if n_tile is None:                                   # rare: N > cap, not /8
                n_tile = 8
                np_ = _ceil_to(n, 8)
    else:
        np_ = _ceil_to(n, n_tile)

    # ---- channel tile: packed-granule multiple dividing C, sized by a VMEM budget ----
    gran = {4: 8, 2: 16, 1: 32}.get(isz, 8)
    if c_tile is None:
        if c % gran != 0:
            c_tile = c                                           # full-dim block is legal
        else:
            budget = 8 << 20                                     # per x buffer
            max_fit = budget // max(1, n_tile * hw * isz)
            if max_fit >= c:
                c_tile = c
            else:
                c_tile = gran
                t = max(gran, (max_fit // gran) * gran)
                while t >= gran:
                    if c % t == 0:
                        c_tile = t
                        break
                    t -= gran
    assert c % c_tile == 0 and (c_tile == c or c_tile % 8 == 0)

    if np_ > n:  # only in the rare fallback path
        x_r = jnp.pad(x_r, ((0, np_ - n), (0, 0), (0, 0)))

    # Weight -> (C, OUTp), bias -> (1, OUTp); only the small OUT dim gets padded.
    w_t = jnp.pad(weight.T, ((0, 0), (0, outp - out_ch)))
    b_p = jnp.pad(bias.reshape(1, out_ch), ((0, 0), (0, outp - out_ch)))

    grid = (np_ // n_tile, c // c_tile)

    # ---- VMEM budget ------------------------------------------------------------------
    wsz = jnp.dtype(weight.dtype).itemsize
    needed = (2 * n_tile * c_tile * hw * isz                 # x (double buffered)
              + 2 * c_tile * outp * wsz                      # weight slices
              + 2 * outp * jnp.dtype(bias.dtype).itemsize    # bias
              + 2 * n_tile * outp * isz                      # output
              + n_tile * outp * 4)                           # f32 accumulator
    vmem_limit = int(min(max(2 * needed, 4 << 20), _vmem_cap_bytes()))

    out_p = pl.pallas_call(
        functools.partial(_decoder_kernel, inv_hw=1.0 / float(hw)),
        out_shape=jax.ShapeDtypeStruct((np_, outp), dtype),
        grid_spec=pltpu.PrefetchScalarGridSpec(
            num_scalar_prefetch=0,
            grid=grid,
            in_specs=[
                pl.BlockSpec((n_tile, c_tile, hw), lambda i, j: (i, j, 0)),
                pl.BlockSpec((c_tile, outp), lambda i, j: (j, 0)),
                pl.BlockSpec((1, outp), lambda i, j: (0, 0)),
            ],
            out_specs=pl.BlockSpec((n_tile, outp), lambda i, j: (i, 0)),
            scratch_shapes=[pltpu.VMEM((n_tile, outp), jnp.float32)],
        ),
        compiler_params=pltpu.CompilerParams(
            dimension_semantics=("parallel", "arbitrary"),
            vmem_limit_bytes=vmem_limit,
        ),
    )(x_r, w_t, b_p)

    return out_p[:n, :out_ch]


if __name__ == "__main__":
    key = jax.random.PRNGKey(0)
    kx, kw, kb = jax.random.split(key, 3)

    # Small demo shapes consistent with the module.
    N, C, H, W = 2, 4, 16, 16
    OUT = 8

    x = jax.random.normal(kx, (N, C, H, W), dtype=jnp.float32)
    # PyTorch Linear layout: (out_features, in_features)
    weight = jax.random.normal(kw, (OUT, C), dtype=jnp.float32) * 0.1
    bias = jax.random.normal(kb, (OUT,), dtype=jnp.float32) * 0.1

    out = resnet_decoder(x, weight, bias)
    jax.block_until_ready(out)

    ref = jnp.mean(x, axis=(2, 3)) @ weight.T + bias
    assert out.shape == (N, OUT)
    assert jnp.allclose(out, ref, atol=1e-4, rtol=1e-4), float(jnp.max(jnp.abs(out - ref)))

    # Second config: HW=49 (ResNet-style, not a multiple of 128) and multiple channel
    # tiles, exercising the accumulator init/accumulate/finalize path.
    N2, C2, H2, W2, OUT2 = 4, 16, 7, 7, 10
    kx2, kw2, kb2 = jax.random.split(jax.random.PRNGKey(1), 3)
    x2 = jax.random.normal(kx2, (N2, C2, H2, W2), dtype=jnp.float32)
    w2 = jax.random.normal(kw2, (OUT2, C2), dtype=jnp.float32) * 0.1
    b2 = jax.random.normal(kb2, (OUT2,), dtype=jnp.float32) * 0.1

    out2 = resnet_decoder(x2, w2, b2, c_tile=8)   # 2 channel steps
    jax.block_until_ready(out2)
    ref2 = jnp.mean(x2, axis=(2, 3)) @ w2.T + b2
    assert out2.shape == (N2, OUT2)
    assert jnp.allclose(out2, ref2, atol=1e-4, rtol=1e-4), float(jnp.max(jnp.abs(out2 - ref2)))

    print("KERNEL_OK")
</pallas_src>

<mosaic_0001>
module attributes {stable_mosaic.version = 11 : i64} {
  func.func @_decoder_kernel(%arg0: i32, %arg1: i32, %arg2: memref<2x4x256xf32, #tpu.memory_space<vmem>>, %arg3: memref<4x128xf32, #tpu.memory_space<vmem>>, %arg4: memref<1x128xf32, #tpu.memory_space<vmem>>, %arg5: memref<2x128xf32, #tpu.memory_space<vmem>>, %arg6: memref<2x128xf32, #tpu.memory_space<vmem>>) attributes {dimension_semantics = [#tpu.dimension_semantics<parallel>, #tpu.dimension_semantics<arbitrary>], iteration_bounds = array<i64: 1, 1>, scalar_prefetch = 0 : i64, scratch_operands = 1 : i64, tpu.core_type = #tpu.core_type<tc>, window_params = [{transform_indices = @transform_0, window_bounds = array<i64: 2, 4, 256>}, {transform_indices = @transform_1, window_bounds = array<i64: 4, 128>}, {pipeline_mode = #tpu.pipeline_mode<synchronous>, transform_indices = @transform_2, window_bounds = array<i64: 1, 128>}, {transform_indices = @transform_3, window_bounds = array<i64: 2, 128>}]} {
    %c0_i32 = arith.constant 0 : i32
    %0 = arith.cmpi eq, %arg1, %c0_i32 : i32
    %1 = arith.extui %0 : i1 to i32
    %c0_i32_0 = arith.constant 0 : i32
    %2 = arith.cmpi ne, %1, %c0_i32_0 : i32
    scf.if %2 {
      %cst_12 = arith.constant 0.000000e+00 : f32
      %13 = vector.broadcast %cst_12 : f32 to vector<2x128xf32>
      %c0_13 = arith.constant 0 : index
      %c0_14 = arith.constant 0 : index
      %14 = vector.load %arg6[%c0_13, %c0_14] : memref<2x128xf32, #tpu.memory_space<vmem>>, vector<2x128xf32>
      tpu.vector_store %arg6[%c0_13, %c0_14], %13 {strides = array<i32>} : memref<2x128xf32, #tpu.memory_space<vmem>>, vector<2x128xf32>,
    } else {
    }
    %c0 = arith.constant 0 : index
    %c0_1 = arith.constant 0 : index
    %c0_2 = arith.constant 0 : index
    %3 = vector.load %arg2[%c0, %c0_1, %c0_2] : memref<2x4x256xf32, #tpu.memory_space<vmem>>, vector<2x4x256xf32>
    %cst = arith.constant dense<0.000000e+00> : vector<2x4xf32>
    %4 = vector.multi_reduction <add>, %3, %cst [2] : vector<2x4x256xf32> to vector<2x4xf32>
    %c0_3 = arith.constant 0 : index
    %c0_4 = arith.constant 0 : index
    %5 = vector.load %arg6[%c0_3, %c0_4] : memref<2x128xf32, #tpu.memory_space<vmem>>, vector<2x128xf32>
    %c0_5 = arith.constant 0 : index
    %c0_6 = arith.constant 0 : index
    %6 = vector.load %arg3[%c0_5, %c0_6] : memref<4x128xf32, #tpu.memory_space<vmem>>, vector<4x128xf32>
    %cst_7 = arith.constant dense<0.000000e+00> : vector<2x128xf32>
    %7 = tpu.matmul %4, %6, %cst_7 {dimension_numbers = #tpu.dot_dimension_numbers<[1], [0], [0], [1], [0, 0, 1, 1], [], []>} : vector<2x4xf32>, vector<4x128xf32>, vector<2x128xf32> -> vector<2x128xf32>
    %8 = arith.addf %5, %7 : vector<2x128xf32>
    %c0_8 = arith.constant 0 : index
    %c0_9 = arith.constant 0 : index
    %9 = vector.load %arg6[%c0_8, %c0_9] : memref<2x128xf32, #tpu.memory_space<vmem>>, vector<2x128xf32>
    tpu.vector_store %arg6[%c0_8, %c0_9], %8 {strides = array<i32>} : memref<2x128xf32, #tpu.memory_space<vmem>>, vector<2x128xf32>,
    %c0_i32_10 = arith.constant 0 : i32
    %10 = arith.cmpi eq, %arg1, %c0_i32_10 : i32
    %11 = arith.extui %10 : i1 to i32
    %c0_i32_11 = arith.constant 0 : i32
    %12 = arith.cmpi ne, %11, %c0_i32_11 : i32
    scf.if %12 {
      %c0_12 = arith.constant 0 : index
      %c0_13 = arith.constant 0 : index
      %13 = vector.load %arg6[%c0_12, %c0_13] : memref<2x128xf32, #tpu.memory_space<vmem>>, vector<2x128xf32>
      %cst_14 = arith.constant 3.906250e-03 : f32
      %14 = vector.broadcast %cst_14 : f32 to vector<2x128xf32>
      %15 = arith.mulf %13, %14 : vector<2x128xf32>
      %c0_15 = arith.constant 0 : index
      %c0_16 = arith.constant 0 : index
      %16 = vector.load %arg4[%c0_15, %c0_16] : memref<1x128xf32, #tpu.memory_space<vmem>>, vector<1x128xf32>
      %17 = vector.broadcast %16 : vector<1x128xf32> to vector<2x128xf32>
      %18 = arith.addf %15, %17 : vector<2x128xf32>
      %c0_17 = arith.constant 0 : index
      %c0_18 = arith.constant 0 : index
      %19 = vector.load %arg5[%c0_17, %c0_18] : memref<2x128xf32, #tpu.memory_space<vmem>>, vector<2x128xf32>
      tpu.vector_store %arg5[%c0_17, %c0_18], %18 {strides = array<i32>} : memref<2x128xf32, #tpu.memory_space<vmem>>, vector<2x128xf32>,
    } else {
    }
    return
  }
  func.func @transform_0(%arg0: i32, %arg1: i32) -> (i32, i32, i32) {
    %c0_i32 = arith.constant 0 : i32
    %c0_i32_0 = arith.constant 0 : i32
    return %arg0, %arg1, %c0_i32 : i32, i32, i32
  }
  func.func @transform_1(%arg0: i32, %arg1: i32) -> (i32, i32) {
    %c0_i32 = arith.constant 0 : i32
    %c0_i32_0 = arith.constant 0 : i32
    return %arg1, %c0_i32 : i32, i32
  }
  func.func @transform_2(%arg0: i32, %arg1: i32) -> (i32, i32) {
    %c0_i32 = arith.constant 0 : i32
    %c0_i32_0 = arith.constant 0 : i32
    %c0_i32_1 = arith.constant 0 : i32
    return %c0_i32, %c0_i32_0 : i32, i32
  }
  func.func @transform_3(%arg0: i32, %arg1: i32) -> (i32, i32) {
    %c0_i32 = arith.constant 0 : i32
    %c0_i32_0 = arith.constant 0 : i32
    return %arg0, %c0_i32 : i32, i32
  }
}

</mosaic_0001>

<bundles_post_ra>
// kernel: tpu_custom_call.1
= control target key start
LH: loop header
LB: loop body
LE: loop exit
PB: predicated region body
PF: predicated region fallthrough
CT: control target
= control target key end

     0   :  { %8 = vsyncpa [#allocation4], 0  ;;  %s351_s0 = inlined_call_operand.hbm [shape: f32[2,4,256], index: 0, kind: input, shape index: {}]   ;;  %s352_s1 = inlined_call_operand.hbm [shape: f32[4,128], index: 1, kind: input, shape index: {}]   ;;  %s353_s2 = inlined_call_operand.vmem [shape: f32[1,128], index: 2, kind: input, shape index: {}]   ;;  %s354_s3 = inlined_call_operand.hbm [shape: f32[2,128], index: 3, kind: output, shape index: {}]  }
   0x1   :  { %9 = vsyncpa [#allocation7], 0 }
   0x2   :  { %10 = vsyncpa [#allocation5], 0  ;;  %s280_s12 = smov [#allocation3]   ;;  %s208_s16 = scalar_lea.hbm %s351_s0, 256 }
   0x3   :  { %s16_s13 = sshll.u32 %s280_s12, 4  ;;  %p209_p0 = scmp.ne.s32.totalorder %s351_s0, %s208_s16  ;;  %s17_s13 = int_to_ptr.vmem [resolvable:$true] %s16_s13 }
   0x4   :  { %p212_p1 = scmp.lt.u32.totalorder %s208_s16, %s351_s0 }
   0x6   :  { %p214_p2 = pnand %p212_p1, %p209_p0 }
   0x8   :  { %217 = shalt.err (!%p214_p2)
}
   0x9   :  { %s218_s21 = scalar_lea.vmem %s17_s13, 256  ;;  %p223_p4 = scmp.lt.s32.totalorder %s17_s13, %s17_s13 }
   0xa   :  { %p219_p3 = scmp.ne.s32.totalorder %s17_s13, %s218_s21  ;;  %p224_p5 = scmp.lt.s32.totalorder %s218_s21, %s218_s21 }
   0xc   :  { %p225_p6 = por %p224_p5, %p223_p4 }
   0xe   :  { %p226_p7 = pnand %p225_p6, %p219_p3 }
  0x10   :  { %229 = shalt.err (!%p226_p7)
}
  0x11   :  { %s281_s22 = smov 128   ;;  %s282_s23 = smov 8  }
  0x12   :  { %22 = dma.hbm_to_vmem [thread:$0]  %s351_s0, 256, %s17_s13, [#allocation4], %s281_s22, %s281_s22, %s282_s23  }
  0x13   :  { %s283_s26 = smov [#allocation6]   ;;  %s230_s30 = scalar_lea.hbm %s352_s1, 64 }
  0x14   :  { %s29_s27 = sshll.u32 %s283_s26, 4  ;;  %p231_p8 = scmp.ne.s32.totalorder %s352_s1, %s230_s30  ;;  %s30_s27 = int_to_ptr.vmem [resolvable:$true] %s29_s27 }
  0x15   :  { %p234_p9 = scmp.lt.u32.totalorder %s230_s30, %s352_s1 }
  0x17   :  { %p236_p10 = pnand %p234_p9, %p231_p8 }
  0x19   :  { %239 = shalt.err (!%p236_p10)
}
  0x1a   :  { %s240_s8 = scalar_lea.vmem %s30_s27, 64  ;;  %p245_p12 = scmp.lt.s32.totalorder %s30_s27, %s30_s27 }
  0x1b   :  { %p241_p11 = scmp.ne.s32.totalorder %s30_s27, %s240_s8  ;;  %p246_p13 = scmp.lt.s32.totalorder %s240_s8, %s240_s8 }
  0x1d   :  { %p247_p0 = por %p246_p13, %p245_p12 }
  0x1f   :  { %p248_p1 = pnand %p247_p0, %p241_p11 }
  0x21   :  { %251 = shalt.err (!%p248_p1)
}
  0x22   :  { %32 = dma.hbm_to_vmem [thread:$0]  %s352_s1, 64, %s30_s27, [#allocation7]  }
  0x23   :  { %274 = dma.done.wait [#allocation4], 256  }
  0x24   :  { %275 = vsyncadd [#allocation4], 4294967040 }
  0x25   :  { %276 = dma.done.wait [#allocation7], 64  }
  0x26   :  { %277 = vsyncadd [#allocation7], 4294967232  ;;  %vm54_vm0 = vcmask 1043456   ;;  %v46_v0 = vld [vmem:[#allocation3] sm:$0xff]  ;;  %v47_v1 = vld [vmem:[#allocation3 + $0x8] sm:$0xff]  ;;  %v284_v11 = vmov 0.0   ;;  %v69_v12 = vlaneseq }
  0x27   :  { %v50_v2 = vcombine.high %v46_v0, %v46_v0  ;;  %v55_v3 = vsel %vm54_vm0, %v46_v0, 0.0  ;;  %v51_v4 = vcombine.high %v47_v1, %v47_v1  ;;  %v60_v6 = vsel %vm54_vm0, %v47_v1, 0.0  ;;  %v66_v10 = vld [vmem:[#allocation6] sm:$0xf]  ;;  %45 = vst [vmem:[#allocation2] sm:$0x3] %v284_v11  ;;  %194 = vmatprep.subr.mxu0 %v284_v11 }
  0x28   :  { %vm285_vm1 = vmmov 0   ;;  %195 = vmatpush3.msk.msra.mxu0 %vm54_vm0, %v66_v10  ;;  %v70_v13 = vand.u32 127, %v69_v12  ;;  %v72_v14 = vshrl.u32 %v69_v12, 7  ;;  %vm79_vm2 = vcmask 1041409   ;;  %v191_v26 = vld [vmem:[%s353_s2] ss:$0 sm:$0xff] }
  0x29   :  { %v56_v5 = vsel %vm54_vm0, %v50_v2, 0.0  ;;  %v61_v7 = vsel %vm54_vm0, %v51_v4, 0.0  ;;  %196 = vmatprep.mubr.msk.f32.mxu0 %vm285_vm1, %v284_v11  ;;  %vm81_vm3 = vcmask 31744   ;;  %s286_s11 = smov [#allocation8]  }
  0x2a   :  { %v57_v8 = vadd.f32 %v56_v5, %v55_v3  ;;  %v62_v9 = vadd.f32 %v61_v7, %v60_v6  ;;  %v73_v16 = vsub.s32 %v70_v13, %v72_v14  ;;  %s179_s12 = sshll.u32 %s286_s11, 4  ;;  %s180_s12 = int_to_ptr.vmem [resolvable:$true] %s179_s12 }
  0x2b   :  { %s252_s13 = scalar_lea.vmem %s180_s12, 32  ;;  %p257_p3 = scmp.lt.s32.totalorder %s180_s12, %s180_s12 }
  0x2c   :  { %58 = vadd.xlane.f32.xlu0 %v57_v8  ;;  %p253_p2 = scmp.ne.s32.totalorder %s180_s12, %s252_s13  ;;  %p258_p4 = scmp.lt.s32.totalorder %s252_s13, %s252_s13 }
  0x2e   :  { %v65_v21 = vld [vmem:[#allocation2] sm:$0x3]  ;;  %p259_p5 = por %p258_p4, %p257_p3 }
  0x30   :  { %63 = vadd.xlane.f32.xlu0 %v62_v9  ;;  %p260_p6 = pnand %p259_p5, %p253_p2 }
  0xb9   :  { %v59_v15 = vpop.xlane.xlu0 %58 }
  0xba   :  { %v74_v18 = vrot.slane %v59_v15, %v73_v16 }
  0xbd   :  { %v64_v17 = vpop.xlane.xlu0 %63 }
  0xbe   :  { %v78_v19 = vrot.slane %v64_v17, %v73_v16 }
  0xc0   :  { %v80_v20 = vsel %vm79_vm2, %v78_v19, %v74_v18 }
  0xc1   :  { %197 = vmatmul.mubr.msk.f32.vlgmr.msra.gmra.mrb[0].mxu0 %vm81_vm3, %v80_v20 }
 0x194   :  { %v153_v22 = vpop.f32.mrb[0].mxu0 }
 0x195   :  { %v157_v23 = vadd.f32 %v153_v22, %v65_v21  ;;  %v198_v24 = vpop.f32.mrb[1].mxu0 }
 0x197   :  { %158 = vst [vmem:[#allocation2] sm:$0x3] %v157_v23 }
 0x19e   :  { %v162_v25 = vld [vmem:[#allocation2] sm:$0x3] }
 0x19f   :  { %v163_v27 = vmul.f32 0.00390625, %v162_v25 }
 0x1a1   :  { %v171_v28 = vadd.f32 %v191_v26, %v163_v27 }
 0x1a3   :  { %172 = vst [vmem:[#allocation8] sm:$0x3] %v171_v28 }
 0x1a4   :  { %263 = shalt.err (!%p260_p6)
}
 0x1a5   :  { %s264_s16 = scalar_lea.hbm %s354_s3, 32 }
 0x1a6   :  { %p265_p7 = scmp.ne.s32.totalorder %s354_s3, %s264_s16  ;;  %p268_p8 = scmp.lt.u32.totalorder %s264_s16, %s354_s3 }
 0x1a8   :  { %p270_p9 = pnand %p268_p8, %p265_p7 }
 0x1aa   :  { %273 = shalt.err (!%p270_p9)
}
 0x1ab   :  { %182 = dma.vmem_to_hbm [thread:$0]  %s180_s12, 32, %s354_s3, [#allocation5]  }
 0x1ac   :  { %278 = dma.done.wait [#allocation5], 32  }
 0x1ad   :  { %279 = vsyncadd [#allocation5], 4294967264 }
 0x1ae   :  { %186 = vsyncpa [#allocation4], 1 }
 0x1af   :  { %187 = vsyncpa [#allocation7], 1 }
 0x1b0   :  { %188 = vsyncpa [#allocation5], 1 }

</bundles_post_ra>
